<compile_context>
chip_gen: v6e
topology: v6e:2x2x1
jax: 0.10.0
libtpu: 0.0.40
codegen_flags: <defaults>
</compile_context>

<pallas_src>
import functools

import jax
import jax.numpy as jnp
from jax.experimental import pallas as pl
from jax.experimental.pallas import tpu as pltpu

_EPS = 1e-5
_NUM_PASSES = 3  # 0: BN1 stats, 1: BN2 stats (recompute conv1), 2: final output


def _conv_block_kernel(x_ref, w_ref, bn_ref, edge_ref, o_ref, stats_ref, *,
                       n_total):
    """One (pass, batch-tile) grid step of the fused residual conv block.

    x_ref    : (1, C, L) f32      -- one batch element, sequence on lanes
    w_ref    : (2, C, 3C) bf16    -- [conv1, conv2]; col k*C+i hits h[i, l+k-1]
    bn_ref   : (4, C, 1) f32      -- [gamma1, beta1, gamma2, beta2]
    edge_ref : (2, L) f32         -- {0,1} masks: [not-first-lane, not-last-lane]
    o_ref    : (1, C, L) f32
    stats_ref: (4, C, 1) f32 VMEM -- [sum1, sumsq1, sum2, sumsq2] accumulators
    """
    p = pl.program_id(0)  # pass index
    b = pl.program_id(1)  # batch tile index

    x = x_ref[0]                           # (C, L) f32
    L = x.shape[1]
    inv_count = 1.0 / (n_total * L)        # BN biased-variance count

    nf = edge_ref[0:1, :]                  # (1, L): 0 at l==0   (l-1 tap)
    nl = edge_ref[1:2, :]                  # (1, L): 0 at l==L-1 (l+1 tap)

    @pl.when(jnp.logical_and(p == 0, b == 0))
    def _init():
        stats_ref[...] = jnp.zeros_like(stats_ref)

    def conv3(h, w2d):
        # k=3 / padding=1 conv as a single im2col MXU matmul.
        # Taps via XLU roll + one VPU multiply by the (1, L) edge mask.
        h_m1 = pltpu.roll(h, 1, axis=1) * nf        # h[:, l-1], zero at l==0
        h_p1 = pltpu.roll(h, L - 1, axis=1) * nl    # h[:, l+1], zero at l==L-1
        hs = jnp.concatenate(
            [h_m1.astype(jnp.bfloat16), h.astype(jnp.bfloat16),
             h_p1.astype(jnp.bfloat16)], axis=0)    # (3C, L) bf16
        # (C, 3C) x (3C, L) -> (C, L), f32 accumulation.
        return jnp.dot(w2d, hs, preferred_element_type=jnp.float32)

    def bn_fold(s, ss, gamma, beta):
        mu = s * inv_count
        var = jnp.maximum(ss * inv_count - mu * mu, 0.0)
        scale = gamma * jax.lax.rsqrt(var + _EPS)
        shift = beta - mu * scale
        return scale, shift

    # conv1(relu(x)) is needed on every pass: cheap to recompute, never spilled.
    y1 = conv3(jnp.maximum(x, 0.0), w_ref[0])

    @pl.when(p == 0)
    def _stats_bn1():
        stats_ref[0] += jnp.sum(y1, axis=1, keepdims=True)
        stats_ref[1] += jnp.sum(y1 * y1, axis=1, keepdims=True)

    @pl.when(p > 0)
    def _later_passes():
        scale1, shift1 = bn_fold(stats_ref[0], stats_ref[1],
                                 bn_ref[0], bn_ref[1])
        r1 = y1 * scale1 + shift1
        y2 = conv3(jnp.maximum(r1, 0.0), w_ref[1])

        @pl.when(p == 1)
        def _stats_bn2():
            stats_ref[2] += jnp.sum(y2, axis=1, keepdims=True)
            stats_ref[3] += jnp.sum(y2 * y2, axis=1, keepdims=True)

        @pl.when(p == _NUM_PASSES - 1)
        def _final():
            scale2, shift2 = bn_fold(stats_ref[2], stats_ref[3],
                                     bn_ref[2], bn_ref[3])
            o_ref[0] = x + y2 * scale2 + shift2


@jax.jit
def conv_module_forward(x_ncl, w1_oik, b1, g1, be1, w2_oik, b2, g2, be2):
    """x_ncl: (N, C, L) as in PyTorch. Returns (N, C, L).

    b1/b2 (conv biases) are accepted for signature parity but not sent to the
    kernel: a constant per-channel bias applied before training-mode BatchNorm
    is exactly cancelled by the mean subtraction.
    """
    del b1, b2
    N, C, L = x_ncl.shape
    x = x_ncl.astype(jnp.float32)

    def pack_w(w_oik):
        # (O, I, K) -> (O, K, I) -> (O, 3C); column k*C+i multiplies h[i, l+k-1]
        return jnp.transpose(w_oik, (0, 2, 1)).reshape(C, 3 * C)

    w_packed = jnp.stack([pack_w(w1_oik), pack_w(w2_oik)]).astype(jnp.bfloat16)
    bn_packed = jnp.stack([g1, be1, g2, be2]).astype(jnp.float32)[..., None]
    lane = jnp.arange(L)
    edge = jnp.stack([lane > 0, lane < L - 1]).astype(jnp.float32)  # (2, L)

    # --- VMEM budget from the block footprint (adapts v5e/v6e/v7x) -----------
    blk_bytes = C * L * 4                       # one (C, L) f32 block
    small_bytes = (w_packed.size * 2 + bn_packed.size * 4 + edge.size * 4)
    # 2x double-buffered x + 2x double-buffered out + in-kernel temporaries
    # (bf16 im2col, y1/y2/r1 f32, casts) + resident small operands + scratch.
    vmem_needed = 16 * blk_bytes + 4 * small_bytes + (64 << 10)
    try:
        phys_vmem = pltpu.get_tpu_info().vmem_capacity_bytes
    except Exception:  # pragma: no cover - conservative fallback (v7x: 64 MiB)
        phys_vmem = 64 * 1024 * 1024
    vmem_limit = int(min(max(vmem_needed, 8 << 20), int(0.75 * phys_vmem)))

    # y1 computed on 3 passes, y2 on 2 passes; each conv = 2*L*3C*C flops/elt.
    flops = 5 * 2 * N * L * (3 * C) * C
    bytes_accessed = 3 * x.size * 4 + x.size * 4 + 3 * small_bytes

    kernel = functools.partial(_conv_block_kernel, n_total=N)
    last = _NUM_PASSES - 1

    return pl.pallas_call(
        kernel,
        out_shape=jax.ShapeDtypeStruct((N, C, L), jnp.float32),
        grid_spec=pltpu.PrefetchScalarGridSpec(
            num_scalar_prefetch=0,
            grid=(_NUM_PASSES, N),              # (pass, batch-tile)
            in_specs=[
                pl.BlockSpec((1, C, L), lambda p, b: (b, 0, 0)),       # x
                pl.BlockSpec((2, C, 3 * C), lambda p, b: (0, 0, 0)),   # weights
                pl.BlockSpec((4, C, 1), lambda p, b: (0, 0, 0)),       # BN affine
                pl.BlockSpec((2, L), lambda p, b: (0, 0)),             # edge masks
            ],
            # Pin the output block to index 0 during the two stats passes so it
            # stays resident (never flushed); track the batch tile only on the
            # final pass -> exactly one HBM write per output block.
            out_specs=pl.BlockSpec(
                (1, C, L), lambda p, b: (jnp.where(p == last, b, 0), 0, 0)),
            scratch_shapes=[pltpu.VMEM((4, C, 1), jnp.float32)],
        ),
        compiler_params=pltpu.CompilerParams(
            # Both axes carry serial state (pass ordering + stats accumulator).
            dimension_semantics=("arbitrary", "arbitrary"),
            vmem_limit_bytes=vmem_limit),
        cost_estimate=pl.CostEstimate(
            flops=flops,
            transcendentals=4 * C * _NUM_PASSES,
            bytes_accessed=bytes_accessed),
    )(x, w_packed, bn_packed, edge)


def _reference_forward(x_ncl, w1_oik, b1, g1, be1, w2_oik, b2, g2, be2):
    """Pure-JAX f32 reference using lax.conv, mirroring PyTorch semantics (with bias)."""
    def conv1d(h, w, b):
        y = jax.lax.conv_general_dilated(
            h, w, window_strides=(1,), padding=((1, 1),),
            dimension_numbers=("NCH", "OIH", "NCH"))
        return y + b[None, :, None]

    def batch_norm(y, g, be, eps=1e-5):
        mu = jnp.mean(y, axis=(0, 2), keepdims=True)
        var = jnp.mean((y - mu) ** 2, axis=(0, 2), keepdims=True)
        return (y - mu) / jnp.sqrt(var + eps) * g[None, :, None] + be[None, :, None]

    res_1 = batch_norm(conv1d(jax.nn.relu(x_ncl), w1_oik, b1), g1, be1)
    res_2 = batch_norm(conv1d(jax.nn.relu(res_1), w2_oik, b2), g2, be2)
    return x_ncl + res_2


if __name__ == "__main__":
    batch, feature_map, seq_len = 2, 8, 128

    key = jax.random.PRNGKey(0)
    k_x, k_w1, k_b1, k_w2, k_b2, k_g1, k_be1, k_g2, k_be2 = jax.random.split(key, 9)

    x = jax.random.normal(k_x, (batch, feature_map, seq_len), dtype=jnp.float32)

    # Conv1d params: weight (out_ch, in_ch, K=3), bias (out_ch,)
    bound = 1.0 / (feature_map * 3) ** 0.5
    w1 = jax.random.uniform(k_w1, (feature_map, feature_map, 3), jnp.float32, -bound, bound)
    b1 = jax.random.uniform(k_b1, (feature_map,), jnp.float32, -bound, bound)
    w2 = jax.random.uniform(k_w2, (feature_map, feature_map, 3), jnp.float32, -bound, bound)
    b2 = jax.random.uniform(k_b2, (feature_map,), jnp.float32, -bound, bound)

    # BatchNorm affine params (perturbed from gamma=1 / beta=0 so the affine
    # path is exercised).
    g1 = 1.0 + 0.1 * jax.random.normal(k_g1, (feature_map,), jnp.float32)
    be1 = 0.1 * jax.random.normal(k_be1, (feature_map,), jnp.float32)
    g2 = 1.0 + 0.1 * jax.random.normal(k_g2, (feature_map,), jnp.float32)
    be2 = 0.1 * jax.random.normal(k_be2, (feature_map,), jnp.float32)

    out = conv_module_forward(x, w1, b1, g1, be1, w2, b2, g2, be2)
    out = jax.block_until_ready(out)

    ref = _reference_forward(x, w1, b1, g1, be1, w2, b2, g2, be2)
    assert out.shape == (batch, feature_map, seq_len)
    # bf16 MXU operands (f32 accumulation) => tolerance loosened vs f32 reference.
    assert jnp.allclose(out, ref, rtol=2e-2, atol=2e-2), "mismatch vs reference"

    print("KERNEL_OK")
</pallas_src>

<mosaic_0001>
module attributes {stable_mosaic.version = 11 : i64} {
  func.func @_conv_block_kernel(%arg0: i32, %arg1: i32, %arg2: memref<1x8x128xf32, #tpu.memory_space<vmem>>, %arg3: memref<2x8x24xbf16, #tpu.memory_space<vmem>>, %arg4: memref<4x8x1xf32, #tpu.memory_space<vmem>>, %arg5: memref<2x128xf32, #tpu.memory_space<vmem>>, %arg6: memref<1x8x128xf32, #tpu.memory_space<vmem>>, %arg7: memref<4x8x1xf32, #tpu.memory_space<vmem>>) attributes {dimension_semantics = [#tpu.dimension_semantics<arbitrary>, #tpu.dimension_semantics<arbitrary>], iteration_bounds = array<i64: 3, 2>, scalar_prefetch = 0 : i64, scratch_operands = 1 : i64, tpu.core_type = #tpu.core_type<tc>, window_params = [{transform_indices = @transform_0, window_bounds = array<i64: 1, 8, 128>}, {pipeline_mode = #tpu.pipeline_mode<synchronous>, transform_indices = @transform_1, window_bounds = array<i64: 2, 8, 24>}, {pipeline_mode = #tpu.pipeline_mode<synchronous>, transform_indices = @transform_2, window_bounds = array<i64: 4, 8, 1>}, {pipeline_mode = #tpu.pipeline_mode<synchronous>, transform_indices = @transform_3, window_bounds = array<i64: 2, 128>}, {transform_indices = @transform_4, window_bounds = array<i64: 1, 8, 128>}]} {
    %c0 = arith.constant 0 : index
    %c0_0 = arith.constant 0 : index
    %c0_1 = arith.constant 0 : index
    %0 = vector.load %arg2[%c0, %c0_0, %c0_1] : memref<1x8x128xf32, #tpu.memory_space<vmem>>, vector<1x8x128xf32>
    %1 = vector.shape_cast %0 : vector<1x8x128xf32> to vector<8x128xf32>
    %c0_2 = arith.constant 0 : index
    %c0_3 = arith.constant 0 : index
    %2 = vector.load %arg5[%c0_2, %c0_3] : memref<2x128xf32, #tpu.memory_space<vmem>>, vector<1x128xf32>
    %c1 = arith.constant 1 : index
    %c0_4 = arith.constant 0 : index
    %3 = vector.load %arg5[%c1, %c0_4] : memref<2x128xf32, #tpu.memory_space<vmem>>, vector<1x128xf32>
    %c0_i32 = arith.constant 0 : i32
    %4 = arith.cmpi eq, %arg0, %c0_i32 : i32
    %c0_i32_5 = arith.constant 0 : i32
    %5 = arith.cmpi eq, %arg1, %c0_i32_5 : i32
    %6 = arith.andi %4, %5 : i1
    %7 = arith.extui %6 : i1 to i32
    %c0_i32_6 = arith.constant 0 : i32
    %8 = arith.cmpi ne, %7, %c0_i32_6 : i32
    scf.if %8 {
      %cst_15 = arith.constant 0.000000e+00 : f32
      %30 = vector.broadcast %cst_15 : f32 to vector<4x8x1xf32>
      %c0_16 = arith.constant 0 : index
      %c0_17 = arith.constant 0 : index
      %c0_18 = arith.constant 0 : index
      %31 = vector.load %arg7[%c0_16, %c0_17, %c0_18] : memref<4x8x1xf32, #tpu.memory_space<vmem>>, vector<4x8x1xf32>
      tpu.vector_store %arg7[%c0_16, %c0_17, %c0_18], %30 {strides = array<i32>} : memref<4x8x1xf32, #tpu.memory_space<vmem>>, vector<4x8x1xf32>,
    } else {
    }
    %cst = arith.constant 0.000000e+00 : f32
    %9 = vector.broadcast %cst : f32 to vector<8x128xf32>
    %10 = arith.maximumf %1, %9 : vector<8x128xf32>
    %c0_7 = arith.constant 0 : index
    %c0_8 = arith.constant 0 : index
    %c0_9 = arith.constant 0 : index
    %11 = vector.load %arg3[%c0_7, %c0_8, %c0_9] : memref<2x8x24xbf16, #tpu.memory_space<vmem>>, vector<1x8x24xbf16>
    %12 = vector.shape_cast %11 : vector<1x8x24xbf16> to vector<8x24xbf16>
    %c1_i32 = arith.constant 1 : i32
    %13 = tpu.dynamic_rotate %10 by %c1_i32 dim 1 : vector<8x128xf32>, i32 -> vector<8x128xf32>
    %14 = vector.broadcast %2 : vector<1x128xf32> to vector<8x128xf32>
    %15 = arith.mulf %13, %14 : vector<8x128xf32>
    %c127_i32 = arith.constant 127 : i32
    %16 = tpu.dynamic_rotate %10 by %c127_i32 dim 1 : vector<8x128xf32>, i32 -> vector<8x128xf32>
    %17 = vector.broadcast %3 : vector<1x128xf32> to vector<8x128xf32>
    %18 = arith.mulf %16, %17 : vector<8x128xf32>
    %19 = arith.truncf %15 : vector<8x128xf32> to vector<8x128xbf16>
    %20 = arith.truncf %10 : vector<8x128xf32> to vector<8x128xbf16>
    %21 = arith.truncf %18 : vector<8x128xf32> to vector<8x128xbf16>
    %22 = tpu.concatenate %19, %20, %21 in 0 : vector<8x128xbf16>, vector<8x128xbf16>, vector<8x128xbf16> -> vector<24x128xbf16>
    %cst_10 = arith.constant dense<0.000000e+00> : vector<8x128xf32>
    %23 = tpu.matmul %12, %22, %cst_10 {dimension_numbers = #tpu.dot_dimension_numbers<[1], [0], [0], [1], [0, 0, 1, 1], [], []>} : vector<8x24xbf16>, vector<24x128xbf16>, vector<8x128xf32> -> vector<8x128xf32>
    %c0_i32_11 = arith.constant 0 : i32
    %24 = arith.cmpi eq, %arg0, %c0_i32_11 : i32
    %25 = arith.extui %24 : i1 to i32
    %c0_i32_12 = arith.constant 0 : i32
    %26 = arith.cmpi ne, %25, %c0_i32_12 : i32
    scf.if %26 {
      %c0_15 = arith.constant 0 : index
      %c0_16 = arith.constant 0 : index
      %c0_17 = arith.constant 0 : index
      %30 = vector.load %arg7[%c0_15, %c0_16, %c0_17] : memref<4x8x1xf32, #tpu.memory_space<vmem>>, vector<1x8x1xf32>
      %31 = vector.shape_cast %30 : vector<1x8x1xf32> to vector<8x1xf32>
      %cst_18 = arith.constant dense<0.000000e+00> : vector<8xf32>
      %32 = vector.multi_reduction <add>, %23, %cst_18 [1] : vector<8x128xf32> to vector<8xf32>
      %33 = vector.shape_cast %32 : vector<8xf32> to vector<8x1xf32>
      %34 = arith.addf %31, %33 : vector<8x1xf32>
      %c0_19 = arith.constant 0 : index
      %c0_20 = arith.constant 0 : index
      %c0_21 = arith.constant 0 : index
      %35 = vector.load %arg7[%c0_19, %c0_20, %c0_21] : memref<4x8x1xf32, #tpu.memory_space<vmem>>, vector<1x8x1xf32>
      %36 = vector.shape_cast %35 : vector<1x8x1xf32> to vector<8x1xf32>
      %37 = vector.shape_cast %34 : vector<8x1xf32> to vector<1x8x1xf32>
      tpu.vector_store %arg7[%c0_19, %c0_20, %c0_21], %37 {strides = array<i32>} : memref<4x8x1xf32, #tpu.memory_space<vmem>>, vector<1x8x1xf32>,
      %c1_22 = arith.constant 1 : index
      %c0_23 = arith.constant 0 : index
      %c0_24 = arith.constant 0 : index
      %38 = vector.load %arg7[%c1_22, %c0_23, %c0_24] : memref<4x8x1xf32, #tpu.memory_space<vmem>>, vector<1x8x1xf32>
      %39 = vector.shape_cast %38 : vector<1x8x1xf32> to vector<8x1xf32>
      %40 = arith.mulf %23, %23 : vector<8x128xf32>
      %cst_25 = arith.constant dense<0.000000e+00> : vector<8xf32>
      %41 = vector.multi_reduction <add>, %40, %cst_25 [1] : vector<8x128xf32> to vector<8xf32>
      %42 = vector.shape_cast %41 : vector<8xf32> to vector<8x1xf32>
      %43 = arith.addf %39, %42 : vector<8x1xf32>
      %c1_26 = arith.constant 1 : index
      %c0_27 = arith.constant 0 : index
      %c0_28 = arith.constant 0 : index
      %44 = vector.load %arg7[%c1_26, %c0_27, %c0_28] : memref<4x8x1xf32, #tpu.memory_space<vmem>>, vector<1x8x1xf32>
      %45 = vector.shape_cast %44 : vector<1x8x1xf32> to vector<8x1xf32>
      %46 = vector.shape_cast %43 : vector<8x1xf32> to vector<1x8x1xf32>
      tpu.vector_store %arg7[%c1_26, %c0_27, %c0_28], %46 {strides = array<i32>} : memref<4x8x1xf32, #tpu.memory_space<vmem>>, vector<1x8x1xf32>,
    } else {
    }
    %c0_i32_13 = arith.constant 0 : i32
    %27 = arith.cmpi sgt, %arg0, %c0_i32_13 : i32
    %28 = arith.extui %27 : i1 to i32
    %c0_i32_14 = arith.constant 0 : i32
    %29 = arith.cmpi ne, %28, %c0_i32_14 : i32
    scf.if %29 {
      %c0_15 = arith.constant 0 : index
      %c0_16 = arith.constant 0 : index
      %c0_17 = arith.constant 0 : index
      %30 = vector.load %arg7[%c0_15, %c0_16, %c0_17] : memref<4x8x1xf32, #tpu.memory_space<vmem>>, vector<1x8x1xf32>
      %31 = vector.shape_cast %30 : vector<1x8x1xf32> to vector<8x1xf32>
      %c1_18 = arith.constant 1 : index
      %c0_19 = arith.constant 0 : index
      %c0_20 = arith.constant 0 : index
      %32 = vector.load %arg7[%c1_18, %c0_19, %c0_20] : memref<4x8x1xf32, #tpu.memory_space<vmem>>, vector<1x8x1xf32>
      %33 = vector.shape_cast %32 : vector<1x8x1xf32> to vector<8x1xf32>
      %c0_21 = arith.constant 0 : index
      %c0_22 = arith.constant 0 : index
      %c0_23 = arith.constant 0 : index
      %34 = vector.load %arg4[%c0_21, %c0_22, %c0_23] : memref<4x8x1xf32, #tpu.memory_space<vmem>>, vector<1x8x1xf32>
      %35 = vector.shape_cast %34 : vector<1x8x1xf32> to vector<8x1xf32>
      %c1_24 = arith.constant 1 : index
      %c0_25 = arith.constant 0 : index
      %c0_26 = arith.constant 0 : index
      %36 = vector.load %arg4[%c1_24, %c0_25, %c0_26] : memref<4x8x1xf32, #tpu.memory_space<vmem>>, vector<1x8x1xf32>
      %37 = vector.shape_cast %36 : vector<1x8x1xf32> to vector<8x1xf32>
      %cst_27 = arith.constant 3.906250e-03 : f32
      %38 = vector.broadcast %cst_27 : f32 to vector<8x1xf32>
      %39 = arith.mulf %31, %38 : vector<8x1xf32>
      %cst_28 = arith.constant 3.906250e-03 : f32
      %40 = vector.broadcast %cst_28 : f32 to vector<8x1xf32>
      %41 = arith.mulf %33, %40 : vector<8x1xf32>
      %42 = arith.mulf %39, %39 : vector<8x1xf32>
      %43 = arith.subf %41, %42 : vector<8x1xf32>
      %cst_29 = arith.constant 0.000000e+00 : f32
      %44 = vector.broadcast %cst_29 : f32 to vector<8x1xf32>
      %45 = arith.maximumf %43, %44 : vector<8x1xf32>
      %cst_30 = arith.constant 9.99999974E-6 : f32
      %46 = vector.broadcast %cst_30 : f32 to vector<8x1xf32>
      %47 = arith.addf %45, %46 : vector<8x1xf32>
      %48 = math.rsqrt %47 : vector<8x1xf32>
      %49 = arith.mulf %35, %48 : vector<8x1xf32>
      %50 = arith.mulf %39, %49 : vector<8x1xf32>
      %51 = arith.subf %37, %50 : vector<8x1xf32>
      %52 = vector.broadcast %49 : vector<8x1xf32> to vector<8x128xf32>
      %53 = arith.mulf %23, %52 : vector<8x128xf32>
      %54 = vector.broadcast %51 : vector<8x1xf32> to vector<8x128xf32>
      %55 = arith.addf %53, %54 : vector<8x128xf32>
      %cst_31 = arith.constant 0.000000e+00 : f32
      %56 = vector.broadcast %cst_31 : f32 to vector<8x128xf32>
      %57 = arith.maximumf %55, %56 : vector<8x128xf32>
      %c1_32 = arith.constant 1 : index
      %c0_33 = arith.constant 0 : index
      %c0_34 = arith.constant 0 : index
      %58 = vector.load %arg3[%c1_32, %c0_33, %c0_34] : memref<2x8x24xbf16, #tpu.memory_space<vmem>>, vector<1x8x24xbf16>
      %59 = vector.shape_cast %58 : vector<1x8x24xbf16> to vector<8x24xbf16>
      %c1_i32_35 = arith.constant 1 : i32
      %60 = tpu.dynamic_rotate %57 by %c1_i32_35 dim 1 : vector<8x128xf32>, i32 -> vector<8x128xf32>
      %61 = vector.broadcast %2 : vector<1x128xf32> to vector<8x128xf32>
      %62 = arith.mulf %60, %61 : vector<8x128xf32>
      %c127_i32_36 = arith.constant 127 : i32
      %63 = tpu.dynamic_rotate %57 by %c127_i32_36 dim 1 : vector<8x128xf32>, i32 -> vector<8x128xf32>
      %64 = vector.broadcast %3 : vector<1x128xf32> to vector<8x128xf32>
      %65 = arith.mulf %63, %64 : vector<8x128xf32>
      %66 = arith.truncf %62 : vector<8x128xf32> to vector<8x128xbf16>
      %67 = arith.truncf %57 : vector<8x128xf32> to vector<8x128xbf16>
      %68 = arith.truncf %65 : vector<8x128xf32> to vector<8x128xbf16>
      %69 = tpu.concatenate %66, %67, %68 in 0 : vector<8x128xbf16>, vector<8x128xbf16>, vector<8x128xbf16> -> vector<24x128xbf16>
      %cst_37 = arith.constant dense<0.000000e+00> : vector<8x128xf32>
      %70 = tpu.matmul %59, %69, %cst_37 {dimension_numbers = #tpu.dot_dimension_numbers<[1], [0], [0], [1], [0, 0, 1, 1], [], []>} : vector<8x24xbf16>, vector<24x128xbf16>, vector<8x128xf32> -> vector<8x128xf32>
      %c1_i32_38 = arith.constant 1 : i32
      %71 = arith.cmpi eq, %arg0, %c1_i32_38 : i32
      %72 = arith.extui %71 : i1 to i32
      %c0_i32_39 = arith.constant 0 : i32
      %73 = arith.cmpi ne, %72, %c0_i32_39 : i32
      scf.if %73 {
        %c2 = arith.constant 2 : index
        %c0_41 = arith.constant 0 : index
        %c0_42 = arith.constant 0 : index
        %77 = vector.load %arg7[%c2, %c0_41, %c0_42] : memref<4x8x1xf32, #tpu.memory_space<vmem>>, vector<1x8x1xf32>
        %78 = vector.shape_cast %77 : vector<1x8x1xf32> to vector<8x1xf32>
        %cst_43 = arith.constant dense<0.000000e+00> : vector<8xf32>
        %79 = vector.multi_reduction <add>, %70, %cst_43 [1] : vector<8x128xf32> to vector<8xf32>
        %80 = vector.shape_cast %79 : vector<8xf32> to vector<8x1xf32>
        %81 = arith.addf %78, %80 : vector<8x1xf32>
        %c2_44 = arith.constant 2 : index
        %c0_45 = arith.constant 0 : index
        %c0_46 = arith.constant 0 : index
        %82 = vector.load %arg7[%c2_44, %c0_45, %c0_46] : memref<4x8x1xf32, #tpu.memory_space<vmem>>, vector<1x8x1xf32>
        %83 = vector.shape_cast %82 : vector<1x8x1xf32> to vector<8x1xf32>
        %84 = vector.shape_cast %81 : vector<8x1xf32> to vector<1x8x1xf32>
        tpu.vector_store %arg7[%c2_44, %c0_45, %c0_46], %84 {strides = array<i32>} : memref<4x8x1xf32, #tpu.memory_space<vmem>>, vector<1x8x1xf32>,
        %c3 = arith.constant 3 : index
        %c0_47 = arith.constant 0 : index
        %c0_48 = arith.constant 0 : index
        %85 = vector.load %arg7[%c3, %c0_47, %c0_48] : memref<4x8x1xf32, #tpu.memory_space<vmem>>, vector<1x8x1xf32>
        %86 = vector.shape_cast %85 : vector<1x8x1xf32> to vector<8x1xf32>
        %87 = arith.mulf %70, %70 : vector<8x128xf32>
        %cst_49 = arith.constant dense<0.000000e+00> : vector<8xf32>
        %88 = vector.multi_reduction <add>, %87, %cst_49 [1] : vector<8x128xf32> to vector<8xf32>
        %89 = vector.shape_cast %88 : vector<8xf32> to vector<8x1xf32>
        %90 = arith.addf %86, %89 : vector<8x1xf32>
        %c3_50 = arith.constant 3 : index
        %c0_51 = arith.constant 0 : index
        %c0_52 = arith.constant 0 : index
        %91 = vector.load %arg7[%c3_50, %c0_51, %c0_52] : memref<4x8x1xf32, #tpu.memory_space<vmem>>, vector<1x8x1xf32>
        %92 = vector.shape_cast %91 : vector<1x8x1xf32> to vector<8x1xf32>
        %93 = vector.shape_cast %90 : vector<8x1xf32> to vector<1x8x1xf32>
        tpu.vector_store %arg7[%c3_50, %c0_51, %c0_52], %93 {strides = array<i32>} : memref<4x8x1xf32, #tpu.memory_space<vmem>>, vector<1x8x1xf32>,
      } else {
      }
      %c2_i32 = arith.constant 2 : i32
      %74 = arith.cmpi eq, %arg0, %c2_i32 : i32
      %75 = arith.extui %74 : i1 to i32
      %c0_i32_40 = arith.constant 0 : i32
      %76 = arith.cmpi ne, %75, %c0_i32_40 : i32
      scf.if %76 {
        %c2 = arith.constant 2 : index
        %c0_41 = arith.constant 0 : index
        %c0_42 = arith.constant 0 : index
        %77 = vector.load %arg7[%c2, %c0_41, %c0_42] : memref<4x8x1xf32, #tpu.memory_space<vmem>>, vector<1x8x1xf32>
        %78 = vector.shape_cast %77 : vector<1x8x1xf32> to vector<8x1xf32>
        %c3 = arith.constant 3 : index
        %c0_43 = arith.constant 0 : index
        %c0_44 = arith.constant 0 : index
        %79 = vector.load %arg7[%c3, %c0_43, %c0_44] : memref<4x8x1xf32, #tpu.memory_space<vmem>>, vector<1x8x1xf32>
        %80 = vector.shape_cast %79 : vector<1x8x1xf32> to vector<8x1xf32>
        %c2_45 = arith.constant 2 : index
        %c0_46 = arith.constant 0 : index
        %c0_47 = arith.constant 0 : index
        %81 = vector.load %arg4[%c2_45, %c0_46, %c0_47] : memref<4x8x1xf32, #tpu.memory_space<vmem>>, vector<1x8x1xf32>
        %82 = vector.shape_cast %81 : vector<1x8x1xf32> to vector<8x1xf32>
        %c3_48 = arith.constant 3 : index
        %c0_49 = arith.constant 0 : index
        %c0_50 = arith.constant 0 : index
        %83 = vector.load %arg4[%c3_48, %c0_49, %c0_50] : memref<4x8x1xf32, #tpu.memory_space<vmem>>, vector<1x8x1xf32>
        %84 = vector.shape_cast %83 : vector<1x8x1xf32> to vector<8x1xf32>
        %cst_51 = arith.constant 3.906250e-03 : f32
        %85 = vector.broadcast %cst_51 : f32 to vector<8x1xf32>
        %86 = arith.mulf %78, %85 : vector<8x1xf32>
        %cst_52 = arith.constant 3.906250e-03 : f32
        %87 = vector.broadcast %cst_52 : f32 to vector<8x1xf32>
        %88 = arith.mulf %80, %87 : vector<8x1xf32>
        %89 = arith.mulf %86, %86 : vector<8x1xf32>
        %90 = arith.subf %88, %89 : vector<8x1xf32>
        %cst_53 = arith.constant 0.000000e+00 : f32
        %91 = vector.broadcast %cst_53 : f32 to vector<8x1xf32>
        %92 = arith.maximumf %90, %91 : vector<8x1xf32>
        %cst_54 = arith.constant 9.99999974E-6 : f32
        %93 = vector.broadcast %cst_54 : f32 to vector<8x1xf32>
        %94 = arith.addf %92, %93 : vector<8x1xf32>
        %95 = math.rsqrt %94 : vector<8x1xf32>
        %96 = arith.mulf %82, %95 : vector<8x1xf32>
        %97 = arith.mulf %86, %96 : vector<8x1xf32>
        %98 = arith.subf %84, %97 : vector<8x1xf32>
        %99 = vector.broadcast %96 : vector<8x1xf32> to vector<8x128xf32>
        %100 = arith.mulf %70, %99 : vector<8x128xf32>
        %101 = arith.addf %1, %100 : vector<8x128xf32>
        %102 = vector.broadcast %98 : vector<8x1xf32> to vector<8x128xf32>
        %103 = arith.addf %101, %102 : vector<8x128xf32>
        %c0_55 = arith.constant 0 : index
        %c0_56 = arith.constant 0 : index
        %c0_57 = arith.constant 0 : index
        %104 = vector.load %arg6[%c0_55, %c0_56, %c0_57] : memref<1x8x128xf32, #tpu.memory_space<vmem>>, vector<1x8x128xf32>
        %105 = vector.shape_cast %104 : vector<1x8x128xf32> to vector<8x128xf32>
        %106 = vector.shape_cast %103 : vector<8x128xf32> to vector<1x8x128xf32>
        tpu.vector_store %arg6[%c0_55, %c0_56, %c0_57], %106 {strides = array<i32>} : memref<1x8x128xf32, #tpu.memory_space<vmem>>, vector<1x8x128xf32>,
      } else {
      }
    } else {
    }
    return
  }
  func.func @transform_0(%arg0: i32, %arg1: i32) -> (i32, i32, i32) {
    %c0_i32 = arith.constant 0 : i32
    %c0_i32_0 = arith.constant 0 : i32
    %c0_i32_1 = arith.constant 0 : i32
    return %arg1, %c0_i32, %c0_i32_0 : i32, i32, i32
  }
  func.func @transform_1(%arg0: i32, %arg1: i32) -> (i32, i32, i32) {
    %c0_i32 = arith.constant 0 : i32
    %c0_i32_0 = arith.constant 0 : i32
    %c0_i32_1 = arith.constant 0 : i32
    %c0_i32_2 = arith.constant 0 : i32
    return %c0_i32, %c0_i32_0, %c0_i32_1 : i32, i32, i32
  }
  func.func @transform_2(%arg0: i32, %arg1: i32) -> (i32, i32, i32) {
    %c0_i32 = arith.constant 0 : i32
    %c0_i32_0 = arith.constant 0 : i32
    %c0_i32_1 = arith.constant 0 : i32
    %c0_i32_2 = arith.constant 0 : i32
    return %c0_i32, %c0_i32_0, %c0_i32_1 : i32, i32, i32
  }
  func.func @transform_3(%arg0: i32, %arg1: i32) -> (i32, i32) {
    %c0_i32 = arith.constant 0 : i32
    %c0_i32_0 = arith.constant 0 : i32
    %c0_i32_1 = arith.constant 0 : i32
    return %c0_i32, %c0_i32_0 : i32, i32
  }
  func.func @transform_4(%arg0: i32, %arg1: i32) -> (i32, i32, i32) {
    %c2_i32 = arith.constant 2 : i32
    %0 = arith.cmpi eq, %arg0, %c2_i32 : i32
    %c0_i32 = arith.constant 0 : i32
    %1 = arith.select %0, %arg1, %c0_i32 : i32
    %c0_i32_0 = arith.constant 0 : i32
    %c0_i32_1 = arith.constant 0 : i32
    %c0_i32_2 = arith.constant 0 : i32
    return %1, %c0_i32_0, %c0_i32_1 : i32, i32, i32
  }
}

</mosaic_0001>

<bundles_post_ra>
// kernel: conv_module_forward.1
= control target key start
LH: loop header
LB: loop body
LE: loop exit
PB: predicated region body
PF: predicated region fallthrough
CT: control target
= control target key end

     0   :  { %9 = vsyncpa [#allocation4], 0  ;;  %s996_s0 = inlined_call_operand.vmem [shape: f32[2,8,128], index: 0, kind: input, shape index: {}]   ;;  %s997_s1 = inlined_call_operand.vmem [shape: bf16[2,8,24], index: 1, kind: input, shape index: {}]   ;;  %s998_s2 = inlined_call_operand.vmem [shape: f32[4,8,1], index: 2, kind: input, shape index: {}]   ;;  %s999_s3 = inlined_call_operand.vmem [shape: f32[2,128], index: 3, kind: input, shape index: {}]   ;;  %s1000_s4 = inlined_call_operand.hbm [shape: f32[2,8,128], index: 4, kind: output, shape index: {}]  }
   0x1   :  { %11 = vsyncpa [#allocation4 + $0x1], 0  ;;  %s815_s15 = smov 0   ;;  %s817_s16 = smov 0  }
   0x2   :  { %s819_s17 = smov 0   ;;  %s821_s18 = smov 0  }
   0x3   :  { %s823_s19 = smov 0   ;;  %s825_s20 = smov 0  }
   0x4   :  { %s827_s21 = smov 0   ;;  %s829_s22 = smov 0  }
   0x5 LB: > { %s551_s23 = sadd.s32 4294967295, %s776_s22   ;;  %s26_s24 = sadd.s32 1, %s768_s20  ;;  %s776_s22 = sphi %s829_s22, %s17_s22   ;;  %s772_s21 = sphi %s827_s21, %s1009_s21   ;;  %s768_s20 = sphi %s825_s20, %s1008_s20   ;;  %s764_s19 = sphi %s823_s19, %s1007_s19   ;;  %s760_s18 = sphi %s821_s18, %s1006_s18   ;;  %s756_s17 = sphi %s819_s17, %s1005_s17   ;;  %s752_s16 = sphi %s817_s16, %s1004_s16   ;;  %s748_s15 = sphi %s815_s15, %s1003_s15  }
   0x6   : > { %s29_s25 = sadd.s32 1, %s772_s21  ;;  %p27_p0 = scmp.ge.s32.totalorder %s26_s24, 2 }
   0x7   : > { %p122_p1 = scmp.eq.s32.totalorder %s772_s21, 2  ;;  %s552_s26 = sadd.s32 4294967294, %s776_s22  }
   0x8   : > { %p139_p2 = scmp.ne.s32.totalorder %s756_s17, %s752_s16  ;;  %s1011_s24 = smov (%p27_p0, %s26_s24), 0 }
   0x9   : > { %s1013_s25 = smov (!%p27_p0, %s29_s25), %s772_s21  ;;  %p140_p4 = scmp.eq.s32.totalorder %s551_s23, 5 }
   0xa   : > { %s123_s27 = scalar_select %p122_p1, %s768_s20, 0 }
   0xb   : > { %p31_p3 = scmp.ge.s32.totalorder %s1013_s25, 3  ;;  %p145_p5 = scmp.ne.s32.totalorder %s752_s16, %s748_s15 }
   0xc   : > { %p146_p6 = scmp.eq.s32.totalorder %s552_s26, 5  ;;  %p870_p7 = por %p140_p4, %p139_p2 }
   0xd   : > { %s1015_s25 = smov (%p31_p3, %s1013_s25), 0  ;;  %p555_p10 = scmp.ge.s32.totalorder %s776_s22, 1 }
   0xe   : > { %p874_p8 = por %p146_p6, %p145_p5  ;;  %p124_p9 = scmp.eq.s32.totalorder %s1015_s25, 2 }
   0xf   : > { %p180_p11 = scmp.lt.s32.totalorder %s776_s22, 7  ;;  %s129_s6 = sadd.s32 1, %s756_s17 }
  0x10   : > { %s125_s30 = scalar_select %p124_p9, %s1011_s24, 0 }
  0x11   : > { %p181_p12 = pnand %p555_p10, %p180_p11 }
  0x12   : > { %s126_s5 = ssub.s32 %s123_s27, %s125_s30  ;;  %s202_s8 = sand.u32 (!%p181_p12), 1, %s752_s16  }
  0x13   : > { %p127_p13 = scmp.eq.s32.totalorder %s126_s5, 0  ;;  %184 = sbr.rel (%p181_p12) target bundleno = 1335 (0x537), region = 36 }
  0x14   : > { %p205_p0 = scmp.lt.s32.totalorder (!%p181_p12), %s760_s18, 1  ;;  %s900_s13 = sshll.u32 (!%p181_p12), %s202_s8, 3 }
  0x15   : > { %s884_s7 = scalar_select %p127_p13, %s756_s17, %s129_s6  }
  0x16   : > { %p215_p1 = scmp.eq.s32.totalorder (!%p181_p12), %s764_s19, 0  ;;  %p216_p2 = scmp.eq.s32.totalorder (!%p181_p12), %s760_s18, 0 }
  0x17   : > { %s204_s5 = scalar_lea.vmem (!%p181_p12), [#allocation3], %s900_s13 }
  0x18   : > { %v891_v0 = vld [vmem:[%s999_s3] ss:$0 sm:$0xff]  ;;  %v896_v1 = vld [vmem:[%s999_s3 + $0x1] ss:$0 sm:$0xff]  ;;  %s206_s14 = scalar_select %p205_p0, %s760_s18, 1 }
  0x19   : > { %p217_p3 = pnand %p216_p2, %p215_p1 }
  0x1a   : > { %s557_s23 = sshll.u32 %s206_s14, 3 }
  0x1b   : > { %s208_s30 = scalar_lea.vmem %s996_s0, %s557_s23  ;;  %220 = sbr.rel (%p217_p3) target bundleno = 35 (0x23), region = 40 }
  0x1c   : > { %v908_v2 = vld [vmem:[%s208_s30] sm:$0xff] }
  0x20   : > { %vm221_vm0 = vcmask 7168   ;;  %v778_v3 = vmov 0.0  }
  0x21   : > { %222 = vst.msk [vmem:[#allocation2] sm:$0xff] %vm221_vm0, %v778_v3  ;;  %223 = vst.msk [vmem:[#allocation2 + $0x8] sm:$0xff] %vm221_vm0, %v778_v3 }
  0x22   : > { %224 = vst.msk [vmem:[#allocation2 + $0x10] sm:$0xff] %vm221_vm0, %v778_v3  ;;  %225 = vst.msk [vmem:[#allocation2 + $0x18] sm:$0xff] %vm221_vm0, %v778_v3 }
  0x23 PF: > { %v226_v4 = vmax.f32 %v908_v2, 0.0  ;;  %v779_v5 = vmov 0.0   ;;  %vm780_vm1 = vmmov 0   ;;  %s781_s6 = smov 127   ;;  %s782_s9 = smov 1   ;;  %vm247_vm2 = vcmask 1043456  }
  0x24   : > { %580 = vmatprep.subr.bf16.mxu0 %v779_v5  ;;  %584 = vmatprep.mubr.msk.bf16.mxu0 %vm780_vm1, %v779_v5  ;;  %v227_v16 = vld [vmem:[%s997_s1] sm:$0xf]  ;;  %vm252_vm3 = vcmask 195584   ;;  %p561_p4 = scmp.ne.s32.totalorder %s764_s19, 0 }
  0x25   : > { %235 = vrot.lane.b32.xlu0 %v226_v4, %s781_s6  ;;  %v243_v8 = vpack.c.bf16 %v226_v4, %v226_v4 }
  0x27   : > { %v246_v13 = vrot.slane %v243_v8, 4 }
  0x29   : > { %228 = vrot.lane.b32.xlu0 %v226_v4, %s782_s9 }
  0x97   : > { %v236_v6 = vpop.permute.xlu0 %235 }
  0x98   : > { %v241_v7 = vmul.f32 %v896_v1, %v236_v6 }
  0x9a   : > { %v244_v9 = vpack.c.bf16 %v241_v7, %v241_v7 }
  0x9b   : > { %v229_v10 = vpop.permute.xlu0 %228 }
  0x9c   : > { %v234_v11 = vmul.f32 %v891_v0, %v229_v10  ;;  %v257_v12 = vsel %vm247_vm2, %v244_v9, 0 }
  0x9d   : > { %581 = vmatpush3.bf16.msra.mxu0 %v257_v12 }
  0x9e   : > { %v242_v14 = vpack.c.bf16 %v234_v11, %v234_v11  ;;  %582 = vmatprep.subr.bf16.mxu0 %v779_v5 }
  0xa0   : > { %v250_v15 = vsel %vm247_vm2, %v242_v14, %v246_v13 }
  0xa1   : > { %583 = vmatpush3.bf16.msra.mxu0 %v250_v15 }
  0xa4   : > { %585 = vmatmul.mubr.msk.bf16.vlgmr.msra.gmra.mxu0 %vm252_vm3, %v227_v16 }
 0x164   : > { %v293_v17 = vpop.f32.mrf.mxu0 }
 0x166   : > { %v586_v18 = vpop.f32.mrf.mxu0  ;;  %301 = sbr.rel (%p561_p4) target bundleno = 508 (0x1fc), region = 44 }
 0x168   : > { %v296_v19 = vpop.f32.mrf.mxu0 }
 0x16a   : > { %v587_v20 = vpop.f32.mrf.mxu0 }
 0x16b   : > { %303 = vadd.xlane.f32.xlu0 %v293_v17  ;;  %v310_v21 = vmul.f32 %v293_v17, %v293_v17  ;;  %v302_v22 = vld [vmem:[#allocation2] sm:$0xff]  ;;  %vm306_vm4 = vcmask 7168   ;;  %v309_v25 = vld [vmem:[#allocation2 + $0x8] sm:$0xff] }
 0x16f   : > { %311 = vadd.xlane.f32.xlu0 %v310_v21 }
 0x1f4   : > { %v304_v23 = vpop.xlane.xlu0 %303 }
 0x1f5   : > { %v305_v24 = vadd.f32 %v304_v23, %v302_v22 }
 0x1f7   : > { %307 = vst.msk [vmem:[#allocation2] sm:$0xff] %vm306_vm4, %v305_v24 }
 0x1f8   : > { %v312_v26 = vpop.xlane.xlu0 %311 }
 0x1f9   : > { %v313_v27 = vadd.f32 %v312_v26, %v309_v25 }
 0x1fb   : > { %314 = vst.msk [vmem:[#allocation2 + $0x8] sm:$0xff] %vm306_vm4, %v313_v27 }
 0x1fc PF: > { %p562_p5 = scmp.le.s32.totalorder %s764_s19, 0 }
 0x1fd   : > { %s786_s27 = smov (!%p562_p5), 127   ;;  %s787_s30 = smov (!%p562_p5), 1  }
 0x1fe   : > { %318 = sbr.rel (%p562_p5) target bundleno = 1310 (0x51e), region = 48  ;;  %p566_p6 = scmp.ne.s32.totalorder (!%p562_p5), %s764_s19, 1 }
 0x203   : > { %v319_v28 = vld [vmem:[#allocation2] sm:$0xff]  ;;  %v321_v29 = vld [vmem:[#allocation2 + $0x8] sm:$0xff]  ;;  %v783_v30 = vmov 0   ;;  %v784_v44 = vmov 0.0   ;;  %vm785_vm5 = vmmov 0  }
 0x204   : > { %678 = vset.pattern.permute.xlu0 %v783_v30  ;;  %v325_v31 = vmul.f32 0.00390625, %v319_v28  ;;  %v326_v32 = vmul.f32 0.00390625, %v321_v29  ;;  %v322_v37 = vld [vmem:[%s998_s2] sm:$0xff]  ;;  %v563_v40 = vld [vmem:[%s998_s2 + $0x8] sm:$0xff]  ;;  %588 = vmatprep.subr.bf16.mxu0 %v784_v44 }
 0x205   : > { %592 = vmatprep.mubr.msk.bf16.mxu0 %vm785_vm5, %v784_v44  ;;  %v564_v59 = vld [vmem:[%s997_s1 + $0x4] sm:$0xf] }
 0x206   : > { %v327_v33 = vmul.f32 %v325_v31, %v325_v31 }
 0x208   : > { %v328_v34 = vsub.f32 %v326_v32, %v327_v33 }
 0x20a   : > { %v329_v35 = vmax.f32 %v328_v34, 0.0 }
 0x20c   : > { %v330_v36 = vadd.f32 1e-05, %v329_v35 }
 0x20e   : > { %679 = vrsqrt.f32 %v330_v36 }
 0x21b   : > { %v680_v38 = vpop.eup %679 }
 0x21c   : > { %v332_v39 = vmul.f32 %v680_v38, %v322_v37 }
 0x21e   : > { %337 = vperm.xlu0 %678, %v332_v39   ;;  %v333_v41 = vmul.f32 %v332_v39, %v325_v31 }
 0x220   : > { %v334_v42 = vsub.f32 %v563_v40, %v333_v41 }
 0x222   : > { %343 = vperm.xlu0 %678, %v334_v42  }
 0x299   : > { %v338_v43 = vpop.permute.xlu0 %337 }
 0x29a   : > { %v340_v45 = vmul.f32 %v338_v43, %v293_v17 }
 0x29d   : > { %v344_v46 = vpop.permute.xlu0 %343 }
 0x29e   : > { %v346_v47 = vadd.f32 %v344_v46, %v340_v45 }
 0x2a0   : > { %v347_v48 = vmax.f32 %v346_v47, 0.0 }
 0x2a2   : > { %353 = vrot.lane.b32.xlu1 %v347_v48, %s786_s27  ;;  %v357_v52 = vpack.c.bf16 %v347_v48, %v347_v48 }
 0x2a4   : > { %v360_v57 = vrot.slane %v357_v52, 4 }
 0x2a6   : > { %350 = vrot.lane.b32.xlu1 %v347_v48, %s787_s30 }
 0x314   : > { %v354_v49 = vpop.permute.xlu1 %353 }
 0x315   : > { %v355_v50 = vmul.f32 %v896_v1, %v354_v49 }
 0x317   : > { %v358_v51 = vpack.c.bf16 %v355_v50, %v355_v50 }
 0x318   : > { %v351_v53 = vpop.permute.xlu1 %350 }
 0x319   : > { %v352_v54 = vmul.f32 %v891_v0, %v351_v53  ;;  %v369_v55 = vsel %vm247_vm2, %v358_v51, 0 }
 0x31a   : > { %589 = vmatpush3.bf16.msra.mxu0 %v369_v55 }
 0x31b   : > { %v356_v56 = vpack.c.bf16 %v352_v54, %v352_v54  ;;  %590 = vmatprep.subr.bf16.mxu0 %v784_v44 }
 0x31d   : > { %v363_v58 = vsel %vm247_vm2, %v356_v56, %v360_v57 }
 0x31e   : > { %591 = vmatpush3.bf16.msra.mxu0 %v363_v58 }
 0x321   : > { %593 = vmatmul.mubr.msk.bf16.vlgmr.msra.gmra.mxu0 %vm252_vm3, %v564_v59 }
 0x3e1   : > { %v405_v60 = vpop.f32.mrf.mxu0 }
 0x3e3   : > { %v594_v61 = vpop.f32.mrf.mxu0  ;;  %414 = sbr.rel (%p566_p6) target bundleno = 1145 (0x479), region = 52 }
 0x3e5   : > { %v408_v62 = vpop.f32.mrf.mxu0 }
 0x3e7   : > { %v595_v63 = vpop.f32.mrf.mxu0 }
 0x3e8   : > { %417 = vadd.xlane.f32.xlu0 %v405_v60  ;;  %v424_v0 = vmul.f32 %v405_v60, %v405_v60  ;;  %v416_v1 = vld [vmem:[#allocation2 + $0x10] sm:$0xff]  ;;  %vm420_vm6 = vcmask 7168   ;;  %v423_v5 = vld [vmem:[#allocation2 + $0x18] sm:$0xff] }
 0x3ec   : > { %425 = vadd.xlane.f32.xlu0 %v424_v0 }
 0x471   : > { %v418_v3 = vpop.xlane.xlu0 %417 }
 0x472   : > { %v419_v4 = vadd.f32 %v418_v3, %v416_v1 }
 0x474   : > { %421 = vst.msk [vmem:[#allocation2 + $0x10] sm:$0xff] %vm420_vm6, %v419_v4 }
 0x475   : > { %v426_v6 = vpop.xlane.xlu0 %425 }
 0x476   : > { %v427_v7 = vadd.f32 %v426_v6, %v423_v5 }
 0x478   : > { %428 = vst.msk [vmem:[#allocation2 + $0x18] sm:$0xff] %vm420_vm6, %v427_v7 }
 0x479 PF: > { %p567_p9 = scmp.ne.s32.totalorder %s764_s19, 2 }
 0x47b   : > { %432 = sbr.rel (%p567_p9) target bundleno = 1310 (0x51e), region = 56 }
 0x480   : > { %v434_v8 = vld [vmem:[#allocation2 + $0x10] sm:$0xff]  ;;  %v436_v9 = vld [vmem:[#allocation2 + $0x18] sm:$0xff]  ;;  %v788_v10 = vmov 0  }
 0x481   : > { %681 = vset.pattern.permute.xlu0 %v788_v10  ;;  %v441_v11 = vmul.f32 0.00390625, %v434_v8  ;;  %v442_v12 = vmul.f32 0.00390625, %v436_v9  ;;  %v568_v17 = vld [vmem:[%s998_s2 + $0x10] sm:$0xff]  ;;  %v569_v20 = vld [vmem:[%s998_s2 + $0x18] sm:$0xff] }
 0x483   : > { %v443_v13 = vmul.f32 %v441_v11, %v441_v11 }
 0x485   : > { %v444_v14 = vsub.f32 %v442_v12, %v443_v13 }
 0x487   : > { %v445_v15 = vmax.f32 %v444_v14, 0.0 }
 0x489   : > { %v446_v16 = vadd.f32 1e-05, %v445_v15 }
 0x48b   : > { %682 = vrsqrt.f32 %v446_v16 }
 0x498   : > { %v683_v18 = vpop.eup %682 }
 0x499   : > { %v448_v19 = vmul.f32 %v683_v18, %v568_v17 }
 0x49b   : > { %453 = vperm.xlu0 %681, %v448_v19   ;;  %v449_v21 = vmul.f32 %v448_v19, %v441_v11 }
 0x49d   : > { %v450_v22 = vsub.f32 %v569_v20, %v449_v21 }
 0x49f   : > { %460 = vperm.xlu0 %681, %v450_v22  }
 0x516   : > { %v454_v23 = vpop.permute.xlu0 %453 }
 0x517   : > { %v456_v24 = vmul.f32 %v454_v23, %v405_v60 }
 0x519   : > { %v457_v25 = vadd.f32 %v456_v24, %v908_v2 }
 0x51a   : > { %v461_v26 = vpop.permute.xlu0 %460 }
 0x51b   : > { %v463_v27 = vadd.f32 %v461_v26, %v457_v25 }
 0x51d   : > { %464 = vst [vmem:[%s204_s5] sm:$0xff] %v463_v27 }
 0x51e PF: > { %p473_p10 = scmp.eq.s32.totalorder %s764_s19, 2  ;;  %s481_s23 = sshll.u32 %s204_s5, 4  ;;  %s482_s23 = int_to_ptr.vmem [resolvable:$true] %s481_s23 }
 0x51f   : > { %s466_s9 = scalar_lea.sflag [#allocation4], %s202_s8  ;;  %s684_s10 = scalar_lea.vmem %s482_s23, 128 }
 0x520   : > { %s1017_s18 = smov (!%p473_p10, %s760_s18), 0  ;;  %p685_p11 = scmp.ne.s32.totalorder %s482_s23, %s684_s10 }
 0x521   : > { %s571_s26 = sshll.u32 %s1017_s18, 7  ;;  %s789_s11 = smov [#allocation3]  }
 0x522   : > { %s479_s6 = scalar_lea.hbm %s1000_s4, %s571_s26  ;;  %p686_p12 = pnand %p685_p11, %p870_p7 }
 0x523   : > { %s688_s12 = sshll.u32 %s789_s11, 4  ;;  %s689_s12 = int_to_ptr.vmem [resolvable:$false] %s688_s12 }
 0x524   : > { %p687_p13 = pneg %p686_p12  ;;  %s690_s19 = scalar_lea.vmem %s689_s12, 256 }
 0x525   : > { %p691_p0 = scmp.lt.s32.totalorder %s482_s23, %s689_s12  ;;  %p692_p1 = scmp.lt.s32.totalorder %s690_s19, %s684_s10 }
 0x527   : > { %p693_p2 = por %p692_p1, %p691_p0 }
 0x529   : > { %p694_p3 = pnand %p693_p2, %p687_p13 }
 0x52b   : > { %697 = shalt.err (!%p694_p3)
}
 0x52c   : > { %s698_s18 = scalar_lea.hbm %s479_s6, 128  ;;  %s702_s5 = scalar_lea.hbm %s1000_s4, 256 }
 0x52d   : > { %p699_p4 = scmp.ne.s32.totalorder %s479_s6, %s698_s18  ;;  %p703_p9 = scmp.lt.s32.totalorder %s479_s6, %s1000_s4 }
 0x52e   : > { %p704_p10 = scmp.lt.s32.totalorder %s702_s5, %s698_s18 }
 0x52f   : > { %p700_p5 = pnand %p699_p4, %p870_p7 }
 0x530   : > { %p705_p11 = por %p704_p10, %p703_p9 }
 0x531   : > { %p701_p6 = pneg %p700_p5 }
 0x533   : > { %p706_p12 = pnand %p705_p11, %p701_p6 }
 0x535   : > { %709 = shalt.err (!%p706_p12)
}
 0x536   : > { %596 = dma.vmem_to_hbm [thread:$0]  (%p870_p7), %s482_s23, 128, %s479_s6, %s466_s9  }
 0x537 PF: > { %p602_p13 = scmp.ge.s32.totalorder %s776_s22, 2  ;;  %s493_s27 = sand.u32 1, %s748_s15  }
 0x538   : > { %s494_s30 = scalar_lea.sflag [#allocation4], %s493_s27 }
 0x539   : > { %p599_p0 = pnand %p602_p13, %p874_p8 }
 0x53b   : > { %p600_p1 = pneg %p599_p0 }
 0x53d   : > { %743 = dma.done.wait (%p600_p1), %s494_s30, 128  }
 0x53e   : > { %745 = vsyncadd (%p600_p1), %s494_s30, 4294967168  ;;  %s17_s22 = sadd.s32 1, %s776_s22   ;;  %s1003_s15 = smov %s752_s16 }
 0x53f   : > { %p14_p2 = scmp.ge.s32.totalorder %s17_s22, 8   ;;  %s1004_s16 = smov %s756_s17 }
 0x540   : > { %s1005_s17 = smov %s884_s7  ;;  %s1006_s18 = smov %s768_s20 }
 0x541   : > { %s1007_s19 = smov %s772_s21  ;;  %s1008_s20 = smov %s1011_s24 }
 0x542   : > { %s1009_s21 = smov %s1015_s25  ;;  %16 = sbr.rel (!%p14_p2) target bundleno = 5 (0x5), region = 101 }
 0x547   :  { %499 = vsyncpa [#allocation4], 1 }
 0x548   :  { %501 = vsyncpa [#allocation4 + $0x1], 1 }

</bundles_post_ra>
